<compile_context>
chip_gen: v6e
topology: v6e:2x2x1
jax: 0.10.0
libtpu: 0.0.40
codegen_flags: <defaults>
</compile_context>

<pallas_src>
import jax
import jax.numpy as jnp
from jax.experimental import pallas as pl
from jax.experimental.pallas import tpu as pltpu


def _bcast_rows_kernel(tok_ref, out_ref):
    # tok_ref : (1, lanes)          -- class token, repeated along lanes only.
    # out_ref : (tile_rows, lanes)  -- output tile.
    # Sublane broadcast + store; the real cost is the output writeback DMA,
    # the broadcast is free filler under it.
    out_ref[...] = jnp.broadcast_to(tok_ref[...], out_ref.shape)


def _divisors(n: int):
    ds = []
    i = 1
    while i * i <= n:
        if n % i == 0:
            ds.append(i)
            if i != n // i:
                ds.append(n // i)
        i += 1
    return sorted(ds)


def _pick_lanes(bs: int, d: int, max_lanes: int) -> int:
    # lanes must be a multiple of d and divide bs*d so (rows, lanes) is a plain
    # C-order reshape of (B, S, D).  Prefer a multiple of 128 (unmasked stores)
    # that fits max_lanes; otherwise fall back to lanes = d (full last dim,
    # masked stores, bounded tiles).
    cands = [k * d for k in _divisors(bs)
             if (k * d) % 128 == 0 and (k * d) <= max_lanes]
    if cands:
        return max(cands)
    return d


def _pick_tile_rows(rows: int, lanes: int, itemsize: int,
                    max_tile_bytes: int, split_bytes: int) -> int:
    # dtype-aware sublane packing granularity: 8 (f32) / 16 (bf16) / 32 (int8).
    sub = max(1, 32 // itemsize)
    row_bytes = lanes * itemsize
    total_bytes = rows * row_bytes

    # Tiny output: a single full-array block, no point splitting.
    if total_bytes <= min(max_tile_bytes, split_bytes):
        return rows

    # VMEM byte budget -> row limit (multiple of sub).
    limit = max(sub, (max_tile_bytes // row_bytes) // sub * sub)
    # Keep >= 2 grid steps for v7x megacore when there is enough work.
    if rows > sub:
        half = -(-((rows + 1) // 2) // sub) * sub
        limit = min(limit, max(sub, half))
    limit = min(limit, rows)
    if limit >= rows:
        return rows
    # Prefer an exact divisor of rows (no ragged masked last block).
    divs = [dv for dv in _divisors(rows) if dv <= limit and dv % sub == 0]
    if divs:
        return max(divs)
    return limit


def class_token_embedding(class_token: jax.Array, batch_size: int,
                          sequence_length: int,
                          *, max_lanes: int = 4096,
                          max_tile_bytes: int = 6 * 1024 * 1024) -> jax.Array:
    """Expand a (1, 1, D) class token to (batch_size, sequence_length, D)."""
    assert class_token.ndim == 3 and class_token.shape[:2] == (1, 1)
    d = class_token.shape[-1]
    dtype = class_token.dtype
    itemsize = jnp.dtype(dtype).itemsize
    bs = batch_size * sequence_length
    total = bs * d

    lanes = _pick_lanes(bs, d, max_lanes)
    rows = total // lanes
    tile_rows = _pick_tile_rows(rows, lanes, itemsize,
                                max_tile_bytes, split_bytes=1 << 20)
    grid = (pl.cdiv(rows, tile_rows),)

    # Tiny lane-dense strip: the token repeated along the lane axis only.
    # Row replication happens inside the kernel.
    reps = lanes // d
    tok_strip = class_token.reshape(1, d)
    if reps > 1:
        tok_strip = jnp.tile(tok_strip, (1, reps))

    tile_bytes = tile_rows * lanes * itemsize
    strip_bytes = lanes * itemsize
    # 2x output tile (double buffer) + 2x strip + headroom; safe on v5e/v6e/v7x.
    vmem_limit = int(min(2 * tile_bytes + 2 * strip_bytes + (8 << 20), 48 << 20))

    out_flat = pl.pallas_call(
        _bcast_rows_kernel,
        out_shape=jax.ShapeDtypeStruct((rows, lanes), dtype),
        grid_spec=pltpu.PrefetchScalarGridSpec(
            num_scalar_prefetch=0,
            grid=grid,
            in_specs=[
                # Same tiny strip (the whole tok_strip array) every step.
                pl.BlockSpec((1, lanes), lambda r: (0, 0)),
            ],
            out_specs=pl.BlockSpec((tile_rows, lanes), lambda r: (r, 0)),
        ),
        compiler_params=pltpu.CompilerParams(
            dimension_semantics=("parallel",),
            vmem_limit_bytes=vmem_limit),
        cost_estimate=pl.CostEstimate(
            flops=0, transcendentals=0,
            bytes_accessed=total * itemsize + strip_bytes),
    )(tok_strip)

    # Free, contiguous reshape back to the PyTorch (B, S, D) layout.
    return out_flat.reshape(batch_size, sequence_length, d)


if __name__ == "__main__":
    key = jax.random.PRNGKey(0)

    # --- Case 1: module-sized small config (class_token_dim = 32). -----------
    class_token_dim = 32
    batch_size, sequence_length = 2, 8
    class_token = jax.random.normal(key, (1, 1, class_token_dim),
                                    dtype=jnp.float32)
    out = class_token_embedding(class_token, batch_size, sequence_length)
    out = jax.block_until_ready(out)
    ref = jnp.broadcast_to(class_token,
                           (batch_size, sequence_length, class_token_dim))
    assert out.shape == (batch_size, sequence_length, class_token_dim)
    assert out.dtype == class_token.dtype
    assert jnp.array_equal(out, ref)

    # --- Case 2: exercises multi-step grid + in-kernel row broadcast. --------
    d2, b2, s2 = 256, 4, 512
    tok2 = jax.random.normal(jax.random.PRNGKey(1), (1, 1, d2),
                             dtype=jnp.float32)
    out2 = jax.block_until_ready(class_token_embedding(tok2, b2, s2))
    ref2 = jnp.broadcast_to(tok2, (b2, s2, d2))
    assert out2.shape == (b2, s2, d2)
    assert jnp.array_equal(out2, ref2)

    print("KERNEL_OK")
</pallas_src>

<mosaic_0001>
module attributes {stable_mosaic.version = 11 : i64} {
  func.func @_bcast_rows_kernel(%arg0: i32, %arg1: memref<1x512xf32, #tpu.memory_space<vmem>>, %arg2: memref<1x512xf32, #tpu.memory_space<vmem>>) attributes {dimension_semantics = [#tpu.dimension_semantics<parallel>], iteration_bounds = array<i64: 1>, scalar_prefetch = 0 : i64, scratch_operands = 0 : i64, tpu.core_type = #tpu.core_type<tc>, window_params = [{pipeline_mode = #tpu.pipeline_mode<synchronous>, transform_indices = @transform_0, window_bounds = array<i64: 1, 512>}, {transform_indices = @transform_1, window_bounds = array<i64: 1, 512>}]} {
    %c0 = arith.constant 0 : index
    %c0_0 = arith.constant 0 : index
    %0 = vector.load %arg1[%c0, %c0_0] : memref<1x512xf32, #tpu.memory_space<vmem>>, vector<1x512xf32>
    %c0_1 = arith.constant 0 : index
    %c0_2 = arith.constant 0 : index
    %1 = vector.load %arg2[%c0_1, %c0_2] : memref<1x512xf32, #tpu.memory_space<vmem>>, vector<1x512xf32>
    tpu.vector_store %arg2[%c0_1, %c0_2], %0 {strides = array<i32>} : memref<1x512xf32, #tpu.memory_space<vmem>>, vector<1x512xf32>,
    return
  }
  func.func @transform_0(%arg0: i32) -> (i32, i32) {
    %c0_i32 = arith.constant 0 : i32
    %c0_i32_0 = arith.constant 0 : i32
    %c0_i32_1 = arith.constant 0 : i32
    return %c0_i32, %c0_i32_0 : i32, i32
  }
  func.func @transform_1(%arg0: i32) -> (i32, i32) {
    %c0_i32 = arith.constant 0 : i32
    %c0_i32_0 = arith.constant 0 : i32
    return %arg0, %c0_i32 : i32, i32
  }
}

</mosaic_0001>

<bundles_post_ra>
// kernel: tpu_custom_call.1
= control target key start
LH: loop header
LB: loop body
LE: loop exit
PB: predicated region body
PF: predicated region fallthrough
CT: control target
= control target key end

     0   :  { %6 = vsyncpa [#allocation3], 0  ;;  %s106_s0 = inlined_call_operand.hbm [shape: f32[1,512], index: 0, kind: input, shape index: {}]   ;;  %s107_s1 = inlined_call_operand.hbm [shape: f32[1,512], index: 1, kind: output, shape index: {}]  }
   0x1   :  { %7 = vsyncpa [#allocation4], 0  ;;  %s88_s6 = smov [#allocation2]  }
   0x2   :  { %s14_s7 = sshll.u32 %s88_s6, 4  ;;  %s15_s7 = int_to_ptr.vmem [resolvable:$true] %s14_s7 }
   0x3   :  { %s52_s8 = scalar_lea.vmem %s15_s7, 64  ;;  %p57_p1 = scmp.lt.s32.totalorder %s15_s7, %s15_s7 }
   0x4   :  { %p53_p0 = scmp.ne.s32.totalorder %s15_s7, %s52_s8  ;;  %p58_p2 = scmp.lt.s32.totalorder %s52_s8, %s52_s8 }
   0x6   :  { %p59_p3 = por %p58_p2, %p57_p1 }
   0x8   :  { %p60_p4 = pnand %p59_p3, %p53_p0 }
   0xa   :  { %63 = shalt.err (!%p60_p4)
}
   0xb   :  { %17 = dma.hbm_to_vmem [thread:$0]  %s106_s0, 64, %s15_s7, [#allocation3]  }
   0xc   :  { %84 = dma.done.wait [#allocation3], 64  }
   0xd   :  { %85 = vsyncadd [#allocation3], 4294967232  ;;  %v22_v0 = vlaneseq  ;;  %s89_s11 = smov [#allocation5]   ;;  %v21_v1 = vld [vmem:[#allocation2] sm:$0xf] }
   0xe   :  { %s33_s12 = sshll.u32 %s89_s11, 4  ;;  %s34_s12 = int_to_ptr.vmem [resolvable:$true] %s33_s12 }
   0xf   :  { %vm24_vm0 = vcmp.lt.s32.totalorder %v22_v0, 512  ;;  %s64_s13 = scalar_lea.vmem %s34_s12, 64  ;;  %p69_p6 = scmp.lt.s32.totalorder %s34_s12, %s34_s12 }
  0x10   :  { %26 = vst.msk [vmem:[#allocation5] sm:$0xf] %vm24_vm0, %v21_v1  ;;  %p65_p5 = scmp.ne.s32.totalorder %s34_s12, %s64_s13  ;;  %p70_p7 = scmp.lt.s32.totalorder %s64_s13, %s64_s13 }
  0x12   :  { %p71_p8 = por %p70_p7, %p69_p6 }
  0x14   :  { %p72_p9 = pnand %p71_p8, %p65_p5 }
  0x16   :  { %75 = shalt.err (!%p72_p9)
}
  0x17   :  { %36 = dma.vmem_to_hbm [thread:$0]  %s34_s12, 64, %s107_s1, [#allocation4]  }
  0x18   :  { %86 = dma.done.wait [#allocation4], 64  }
  0x19   :  { %87 = vsyncadd [#allocation4], 4294967232 }
  0x1a   :  { %40 = vsyncpa [#allocation3], 1 }
  0x1b   :  { %41 = vsyncpa [#allocation4], 1 }

</bundles_post_ra>
